<compile_context>
chip_gen: v6e
topology: v6e:2x2x1
jax: 0.10.0
libtpu: 0.0.40
codegen_flags: <defaults>
</compile_context>

<pallas_src>
import jax
import jax.numpy as jnp
from jax.experimental import pallas as pl
from jax.experimental.pallas import tpu as pltpu

# ----- small, forward-consistent config -----
B = 2
SEQ_LEN = 16
PRED_LEN = 16          # must equal SEQ_LEN for the projection to be shape-consistent
ENC_IN = 4             # channels
NUM_EXPERTS = 4
MOVING_AVG = 5         # odd moving-average window for series_decomp

LC = SEQ_LEN * ENC_IN        # 64  (flattened input width, natural (l, c) ordering)
EP = NUM_EXPERTS * PRED_LEN  # 64  (gating logits width)


# --------------------------------------------------------------------------------------
# Kernel: one MXU dot + bias + softmax.  No transposes, no reshapes, no slicing.
#   x_ref : [B, L*C]   (row-major flatten of [B, L, C])
#   w_ref : [L*C, E*P] (fully folded decomp + seasonal/trend + projection weight)
#   b_ref : [1, E*P]   (fully folded bias)
#   out_ref: [B, E*P]
# --------------------------------------------------------------------------------------
def gating_kernel(x_ref, w_ref, b_ref, out_ref):
    dec = jnp.dot(x_ref[...], w_ref[...],
                  preferred_element_type=jnp.float32) + b_ref[...]      # [B, E*P]

    # softmax over dim=1 (all num_experts*pred_len logits), exact f32 math
    m = jnp.max(dec, axis=1, keepdims=True)
    e = jnp.exp(dec - m)
    inv = pl.reciprocal(jnp.sum(e, axis=1, keepdims=True), approx=False)
    out_ref[...] = (e * inv).astype(out_ref.dtype)


@jax.jit
def gating_forward(x, w_total, b_total):
    b = x.shape[0]
    x_flat = x.reshape(b, LC)   # zero-copy row-major flatten of [B, L, C]
    cost = pl.CostEstimate(
        flops=2 * b * LC * EP + 4 * b * EP,
        transcendentals=b * EP,
        bytes_accessed=4 * (x_flat.size + w_total.size + b_total.size + b * EP),
    )
    return pl.pallas_call(
        gating_kernel,
        out_shape=jax.ShapeDtypeStruct((b, EP), jnp.float32),
        in_specs=[pl.BlockSpec(memory_space=pltpu.MemorySpace.VMEM)] * 3,
        out_specs=pl.BlockSpec(memory_space=pltpu.MemorySpace.VMEM),
        cost_estimate=cost,
    )(x_flat, w_total, b_total)


# --------------------------------------------------------------------------------------
# Parameter folding (done once, offline; exact algebra for ANY trained weights).
# --------------------------------------------------------------------------------------
def _moving_average_matrix(length, window):
    """A such that trend(t) = (A @ x_time)(t) for the replicate-padded moving average."""
    pad = (window - 1) // 2
    eye = jnp.eye(length, dtype=jnp.float32)                  # rows = time
    front = jnp.repeat(eye[:1, :], pad, axis=0)
    end = jnp.repeat(eye[-1:, :], pad, axis=0)
    epad = jnp.concatenate([front, eye, end], axis=0)         # [L + 2*pad, L]
    return jnp.stack([epad[k:k + length] for k in range(window)], axis=0).mean(axis=0)


def fold_params(params):
    """Fold decomp + seasonal/trend Linears + projection into one weight and one bias.

    enc_out[b,p,c] = sum_l x[b,l,c] * W_comb[l,p] + b_comb[p]
      with W_comb = sw^T + A^T (tw - sw)^T            (A = moving-average matrix)
    dec[b,o]     = sum_{p,c} pw[o, p*C + c] * enc_out[b,p,c] + pb[o]
                 = sum_{l,c} x[b,l,c] * W_total[l*C + c, o] + b_total[o]
    """
    sw, sb, tw, tb, pw, pb = params
    A = _moving_average_matrix(SEQ_LEN, MOVING_AVG)                        # [L, L]
    w_comb = sw.T + jnp.dot(A.T, (tw - sw).T,
                            precision=jax.lax.Precision.HIGHEST)           # [L, P]
    b_comb = (sb + tb).reshape(PRED_LEN)                                   # [P]

    # PyTorch flattens enc_out as (p, c): pw[o, p*C + c]
    pw3 = pw.reshape(EP, PRED_LEN, ENC_IN)                                 # [E*P, P, C]
    # W_total rows in the NATURAL (l, c) flatten order -> wrapper needs no transpose.
    w_total = jnp.einsum('lp,opc->lco', w_comb, pw3,
                         precision=jax.lax.Precision.HIGHEST).reshape(LC, EP)
    b_total = (jnp.einsum('opc,p->o', pw3, b_comb,
                          precision=jax.lax.Precision.HIGHEST)
               + pb.reshape(EP)).reshape(1, EP)
    return w_total, b_total


# --------------------------------------------------------------------------------------
# Pure-JAX reference mirroring the PyTorch forward (unfolded), for validation.
# --------------------------------------------------------------------------------------
def gating_ref(x, params):
    sw, sb, tw, tb, pw, pb = params
    pad = (MOVING_AVG - 1) // 2
    front = jnp.repeat(x[:, :1, :], pad, axis=1)
    end = jnp.repeat(x[:, -1:, :], pad, axis=1)
    xpad = jnp.concatenate([front, x, end], axis=1)
    trend = jnp.stack([xpad[:, k:k + SEQ_LEN, :] for k in range(MOVING_AVG)], 0).mean(0)
    seasonal = x - trend
    s = jnp.einsum('blc,pl->bcp', seasonal, sw) + sb[0]
    t = jnp.einsum('blc,pl->bcp', trend, tw) + tb[0]
    enc = jnp.transpose(s + t, (0, 2, 1))              # [B, P, C]
    flat = enc.reshape(x.shape[0], -1)                 # (p, c) flatten, as in PyTorch
    dec = flat @ pw.T + pb[0]
    return jax.nn.softmax(dec, axis=1)


# --------------------------------------------------------------------------------------
# Parameter initialization
# --------------------------------------------------------------------------------------
def init_params():
    """Module-faithful init: Linear_Seasonal / Linear_Trend weights = 1/seq_len * ones."""
    key = jax.random.PRNGKey(0)
    k1, k2, k3, k4 = jax.random.split(key, 4)
    sw = jnp.full((PRED_LEN, SEQ_LEN), 1.0 / SEQ_LEN, dtype=jnp.float32)
    tw = jnp.full((PRED_LEN, SEQ_LEN), 1.0 / SEQ_LEN, dtype=jnp.float32)
    bound = 1.0 / (SEQ_LEN ** 0.5)
    sb = jax.random.uniform(k1, (1, PRED_LEN), jnp.float32, -bound, bound)
    tb = jax.random.uniform(k2, (1, PRED_LEN), jnp.float32, -bound, bound)
    pbound = 1.0 / (LC ** 0.5)
    pw = jax.random.uniform(k3, (EP, LC), jnp.float32, -pbound, pbound)
    pb = jax.random.uniform(k4, (1, EP), jnp.float32, -pbound, pbound)
    return sw, sb, tw, tb, pw, pb


def random_params(key):
    """Fully random ("trained") weights — exercises the generic fold (sw != tw)."""
    k1, k2, k3, k4, k5, k6 = jax.random.split(key, 6)
    bound = 1.0 / (SEQ_LEN ** 0.5)
    sw = jax.random.uniform(k1, (PRED_LEN, SEQ_LEN), jnp.float32, -bound, bound)
    tw = jax.random.uniform(k2, (PRED_LEN, SEQ_LEN), jnp.float32, -bound, bound)
    sb = jax.random.uniform(k3, (1, PRED_LEN), jnp.float32, -bound, bound)
    tb = jax.random.uniform(k4, (1, PRED_LEN), jnp.float32, -bound, bound)
    pbound = 1.0 / (LC ** 0.5)
    pw = jax.random.uniform(k5, (EP, LC), jnp.float32, -pbound, pbound)
    pb = jax.random.uniform(k6, (1, EP), jnp.float32, -pbound, pbound)
    return sw, sb, tw, tb, pw, pb


if __name__ == "__main__":
    x = jax.random.normal(jax.random.PRNGKey(0), (B, SEQ_LEN, ENC_IN), jnp.float32)

    # --- module-faithful init ---
    params = init_params()
    w_total, b_total = fold_params(params)
    out = jax.block_until_ready(gating_forward(x, w_total, b_total))
    ref = gating_ref(x, params)
    assert out.shape == (B, EP)
    assert jnp.allclose(out, ref, atol=2e-5, rtol=2e-5), "mismatch vs JAX reference"
    assert jnp.allclose(jnp.sum(out, axis=1), 1.0, atol=1e-5), "softmax rows must sum to 1"

    # --- generic (trained-like) weights: validates the fold is exact algebra, not a
    #     special case of the ones/seq_len init (sw != tw so A actually matters) ---
    rparams = random_params(jax.random.PRNGKey(1))
    w_r, b_r = fold_params(rparams)
    out_r = jax.block_until_ready(gating_forward(x, w_r, b_r))
    ref_r = gating_ref(x, rparams)
    assert jnp.allclose(out_r, ref_r, atol=1e-4, rtol=1e-4), "mismatch vs reference (random weights)"

    print("KERNEL_OK")
</pallas_src>

<mosaic_0001>
module attributes {stable_mosaic.version = 11 : i64} {
  func.func @gating_kernel(%arg0: memref<2x64xf32, #tpu.memory_space<vmem>>, %arg1: memref<64x64xf32, #tpu.memory_space<vmem>>, %arg2: memref<1x64xf32, #tpu.memory_space<vmem>>, %arg3: memref<2x64xf32, #tpu.memory_space<vmem>>) attributes {dimension_semantics = [], scalar_prefetch = 0 : i64, scratch_operands = 0 : i64, tpu.core_type = #tpu.core_type<tc>} {
    %c0 = arith.constant 0 : index
    %c0_0 = arith.constant 0 : index
    %0 = vector.load %arg0[%c0, %c0_0] : memref<2x64xf32, #tpu.memory_space<vmem>>, vector<2x64xf32>
    %c0_1 = arith.constant 0 : index
    %c0_2 = arith.constant 0 : index
    %1 = vector.load %arg1[%c0_1, %c0_2] : memref<64x64xf32, #tpu.memory_space<vmem>>, vector<64x64xf32>
    %cst = arith.constant dense<0.000000e+00> : vector<2x64xf32>
    %2 = tpu.matmul %0, %1, %cst {dimension_numbers = #tpu.dot_dimension_numbers<[1], [0], [0], [1], [0, 0, 1, 1], [], []>} : vector<2x64xf32>, vector<64x64xf32>, vector<2x64xf32> -> vector<2x64xf32>
    %c0_3 = arith.constant 0 : index
    %c0_4 = arith.constant 0 : index
    %3 = vector.load %arg2[%c0_3, %c0_4] : memref<1x64xf32, #tpu.memory_space<vmem>>, vector<1x64xf32>
    %4 = vector.broadcast %3 : vector<1x64xf32> to vector<2x64xf32>
    %5 = arith.addf %2, %4 : vector<2x64xf32>
    %cst_5 = arith.constant dense<0xFF800000> : vector<2xf32>
    %6 = vector.multi_reduction <maximumf>, %5, %cst_5 [1] : vector<2x64xf32> to vector<2xf32>
    %7 = vector.shape_cast %6 : vector<2xf32> to vector<2x1xf32>
    %8 = vector.broadcast %7 : vector<2x1xf32> to vector<2x64xf32>
    %9 = arith.subf %5, %8 : vector<2x64xf32>
    %10 = math.exp %9 : vector<2x64xf32>
    %cst_6 = arith.constant dense<0.000000e+00> : vector<2xf32>
    %11 = vector.multi_reduction <add>, %10, %cst_6 [1] : vector<2x64xf32> to vector<2xf32>
    %12 = vector.shape_cast %11 : vector<2xf32> to vector<2x1xf32>
    %13 = tpu.reciprocal %12 : vector<2x1xf32> -> vector<2x1xf32>
    %14 = vector.broadcast %13 : vector<2x1xf32> to vector<2x64xf32>
    %15 = arith.mulf %10, %14 : vector<2x64xf32>
    %c0_7 = arith.constant 0 : index
    %c0_8 = arith.constant 0 : index
    %16 = vector.load %arg3[%c0_7, %c0_8] : memref<2x64xf32, #tpu.memory_space<vmem>>, vector<2x64xf32>
    tpu.vector_store %arg3[%c0_7, %c0_8], %15 {strides = array<i32>} : memref<2x64xf32, #tpu.memory_space<vmem>>, vector<2x64xf32>,
    return
  }
}

</mosaic_0001>

<bundles_post_ra>
// kernel: gating_forward.1
= control target key start
LH: loop header
LB: loop body
LE: loop exit
PB: predicated region body
PF: predicated region fallthrough
CT: control target
= control target key end

     0   :  { %v191_v1 = vmov 0.0   ;;  %vm192_vm0 = vmmov 0   ;;  %s250_s0 = inlined_call_operand.vmem [shape: f32[2,64], index: 0, kind: input, shape index: {}]   ;;  %s251_s1 = inlined_call_operand.vmem [shape: f32[64,64], index: 1, kind: input, shape index: {}]   ;;  %s252_s2 = inlined_call_operand.vmem [shape: f32[1,64], index: 2, kind: input, shape index: {}]   ;;  %s253_s3 = inlined_call_operand.hbm [shape: f32[2,64], index: 3, kind: output, shape index: {}]  }
   0x1   :  { %v23_v0 = vld [vmem:[%s251_s1 + $0x38] sm:$0xff]  ;;  %143 = vmatprep.subr.mxu0 %v191_v1  ;;  %v22_v2 = vld [vmem:[%s251_s1 + $0x30] sm:$0xff]  ;;  %159 = vmatprep.mubr.msk.f32.mxu0 %vm192_vm0, %v191_v1  ;;  %v21_v3 = vld [vmem:[%s251_s1 + $0x28] sm:$0xff] }
   0x2   :  { %144 = vmatpush3.msra.mxu0 %v23_v0 }
   0x3   :  { %145 = vmatprep.subr.mxu0 %v191_v1 }
   0x4   :  { %8 = vsyncpa [#allocation3], 0  ;;  %146 = vmatpush3.msra.mxu0 %v22_v2  ;;  %v20_v4 = vld [vmem:[%s251_s1 + $0x20] sm:$0xff]  ;;  %v19_v5 = vld [vmem:[%s251_s1 + $0x18] sm:$0xff]  ;;  %vm31_vm1 = vcmask 523264   ;;  %vm105_vm2 = vcmask 517120  }
   0x5   :  { %147 = vmatprep.subr.mxu0 %v191_v1  ;;  %v18_v6 = vld [vmem:[%s251_s1 + $0x10] sm:$0xff]  ;;  %v17_v7 = vld [vmem:[%s251_s1 + $0x8] sm:$0xff]  ;;  %v16_v8 = vld [vmem:[%s251_s1] sm:$0xff] }
   0x6   :  { %148 = vmatpush3.msra.mxu0 %v21_v3  ;;  %v15_v9 = vld [vmem:[%s250_s0] sm:$0x3]  ;;  %s193_s0 = smov [#allocation2]  }
   0x7   :  { %149 = vmatprep.subr.mxu0 %v191_v1  ;;  %v132_v10 = vld [vmem:[%s252_s2] ss:$0 sm:$0xff]  ;;  %s124_s1 = sshll.u32 %s193_s0, 4  ;;  %s125_s1 = int_to_ptr.vmem [resolvable:$true] %s124_s1 }
   0x8   :  { %150 = vmatpush3.msra.mxu0 %v20_v4  ;;  %s169_s2 = scalar_lea.vmem %s125_s1, 32  ;;  %p174_p1 = scmp.lt.s32.totalorder %s125_s1, %s125_s1 }
   0x9   :  { %151 = vmatprep.subr.mxu0 %v191_v1  ;;  %p170_p0 = scmp.ne.s32.totalorder %s125_s1, %s169_s2  ;;  %p175_p2 = scmp.lt.s32.totalorder %s169_s2, %s169_s2 }
   0xa   :  { %152 = vmatpush3.msra.mxu0 %v19_v5 }
   0xb   :  { %153 = vmatprep.subr.mxu0 %v191_v1  ;;  %p176_p3 = por %p175_p2, %p174_p1 }
   0xc   :  { %154 = vmatpush3.msra.mxu0 %v18_v6 }
   0xd   :  { %155 = vmatprep.subr.mxu0 %v191_v1  ;;  %p177_p4 = pnand %p176_p3, %p170_p0 }
   0xe   :  { %156 = vmatpush3.msra.mxu0 %v17_v7 }
   0xf   :  { %157 = vmatprep.subr.mxu0 %v191_v1 }
  0x10   :  { %158 = vmatpush3.msra.mxu0 %v16_v8 }
  0x11   :  { %160 = vmatmul.mubr.msk.f32.vlgmr.msra.gmra.mxu0 %vm31_vm1, %v15_v9 }
  0xd1   :  { %v101_v11 = vpop.f32.mrf.mxu0 }
  0xd2   :  { %v102_v12 = vadd.f32 %v132_v10, %v101_v11 }
  0xd3   :  { %v161_v13 = vpop.f32.mrf.mxu0 }
  0xd4   :  { %v106_v14 = vsel %vm105_vm2, %v102_v12, -inf }
  0xd5   :  { %107 = vmax.xlane.f32.xlu0 %v106_v14 }
 0x15e   :  { %v108_v15 = vpop.xlane.xlu0 %107 }
 0x15f   :  { %v109_v16 = vsub.f32 %v102_v12, %v108_v15 }
 0x161   :  { %v110_v17 = vmul.f32 1.442695, %v109_v16 }
 0x163   :  { %165 = vpow2.f32 %v110_v17 }
 0x170   :  { %v166_v18 = vpop.eup %165 }
 0x171   :  { %v112_v19 = vsel %vm105_vm2, %v166_v18, 0.0 }
 0x172   :  { %113 = vadd.xlane.f32.xlu0 %v112_v19 }
 0x1fb   :  { %v114_v20 = vpop.xlane.xlu0 %113 }
 0x1fc   :  { %167 = vrcp.f32 %v114_v20 }
 0x209   :  { %v168_v21 = vpop.eup %167 }
 0x20a   :  { %v116_v22 = vmul.f32 %v168_v21, %v166_v18 }
 0x20c   :  { %117 = vst.msk [vmem:[#allocation2] sm:$0x3] %vm105_vm2, %v116_v22 }
 0x20d   :  { %180 = shalt.err (!%p177_p4)
}
 0x20e   :  { %127 = dma.vmem_to_hbm [thread:$0]  %s125_s1, 32, %s253_s3, [#allocation3]  }
 0x20f   :  { %189 = dma.done.wait [#allocation3], 32  }
 0x210   :  { %190 = vsyncadd [#allocation3], 4294967264 }
 0x211   :  { %131 = vsyncpa [#allocation3], 1 }

</bundles_post_ra>
